<compile_context>
chip_gen: v7x
topology: tpu7x:2x2x1
jax: 0.10.0
libtpu: 0.0.40
codegen_flags: <defaults>
</compile_context>

<pallas_src>
import functools

import jax
import jax.numpy as jnp
from jax.experimental import pallas as pl
from jax.experimental.pallas import tpu as pltpu

LANE = 128


def _round_up(n, m):
    return ((n + m - 1) // m) * m


def gru_step_kernel(a_ref, wg_ref, whead_ref, out_ref, *, I, H):
    # a_ref lanes: [h0 (H) | x (I) | 1 | zero-pad]
    a = a_ref[...]
    col = jax.lax.broadcasted_iota(jnp.int32, a.shape, 1)
    in_x = (col >= H) & (col < H + I)

    # F.normalize on the x lanes only: x * rsqrt(max(sum(x^2), 1e-24))
    xsq = jnp.where(in_x, a * a, 0.0)
    scale = jax.lax.rsqrt(jnp.maximum(jnp.sum(xsq, axis=1, keepdims=True), 1e-24))
    a = jnp.where(in_x, a * scale, a)

    # Single fused MXU pass: all six per-gate matmuls + both bias adds.
    # Output lanes: [r | z | n_in | n_hid | zero-pad]
    g = jnp.dot(a, wg_ref[...], preferred_element_type=jnp.float32)

    h0 = a[:, :H]                               # untouched by the norm mask
    rz = jax.nn.sigmoid(g[:, :2 * H])           # one EUP pass for r and z
    r, z = rz[:, :H], rz[:, H:2 * H]
    n = jnp.tanh(g[:, 2 * H:3 * H] + r * g[:, 3 * H:4 * H])
    h_new = (1.0 - z) * n + z * h0

    # Head + hn passthrough in one MXU pass. whead rows: [:H] weights (with an
    # identity block feeding the last H lanes), row H = bias row (zero there).
    full = (jnp.dot(h_new, whead_ref[pl.ds(0, H), :],
                    preferred_element_type=jnp.float32)
            + whead_ref[pl.ds(H, 1), :])
    lane = jax.lax.broadcasted_iota(jnp.int32, full.shape, 1)
    # sigmoid on the head lanes, raw h_new in the last H lanes; single
    # unmasked 128-lane store.
    out_ref[...] = jnp.where(lane < full.shape[1] - H,
                             jax.nn.sigmoid(full), full)


def pack_params(params, input_size, hidden_size, output_size):
    """Repack canonical (PyTorch-layout) GRU params into fused lane-dense slabs."""
    I, H, O = input_size, hidden_size, output_size
    w_ih = params["w_ih"]                      # (3, I, H), gate order r, z, n
    w_hh = params["w_hh"]                      # (3, H, H)
    b_ih = params["b_ih"].reshape(3, H)
    b_hh = params["b_hh"].reshape(3, H)

    # --- Fused gate slab ------------------------------------------------------
    # Contraction rows: [h0 (H) | x (I) | ones (1) | zero-pad to mult of 8]
    # Output lanes:     [r | z | n_in | n_hid | zero-pad to mult of 128]
    G = 4 * H
    G_pad = _round_up(G, LANE)
    K_pad = _round_up(H + I + 1, 8)

    wg = jnp.zeros((K_pad, G_pad), jnp.float32)
    wg = wg.at[:H, 0:H].set(w_hh[0])
    wg = wg.at[:H, H:2 * H].set(w_hh[1])
    wg = wg.at[:H, 3 * H:4 * H].set(w_hh[2])
    wg = wg.at[H:H + I, 0:H].set(w_ih[0])
    wg = wg.at[H:H + I, H:2 * H].set(w_ih[1])
    wg = wg.at[H:H + I, 2 * H:3 * H].set(w_ih[2])
    bias_row = jnp.concatenate(
        [b_ih[0] + b_hh[0], b_ih[1] + b_hh[1], b_ih[2], b_hh[2]])
    wg = wg.at[H + I, :G].set(bias_row)

    # --- Head slab (Linear weight + bias + hn passthrough) --------------------
    # rows: [h_new (H) | bias row | zero-pad];  lanes: [y logits (O) | 0 | I_H]
    O_pad = LANE
    HK_pad = _round_up(H + 1, 8)
    whead = jnp.zeros((HK_pad, O_pad), jnp.float32)
    whead = whead.at[:H, :O].set(params["w_lin"])
    whead = whead.at[H, :O].set(params["b_lin"].reshape(-1))
    whead = whead.at[:H, O_pad - H:].set(jnp.eye(H, dtype=jnp.float32))
    return wg, whead


def gru_forward(x, h0, params):
    """x: (B, I) f32, h0: (1, B, H) f32. Returns (out (1,B,O), hn (1,B,H))."""
    B, I = x.shape
    H = h0.shape[-1]
    O = params["w_lin"].shape[-1]
    assert O + H <= LANE, "y and hn must co-fit in one 128-lane output slab"

    wg, whead = pack_params(params, I, H, O)
    K_pad = wg.shape[0]
    O_pad = whead.shape[-1]

    # Activation slab [h0 | x | 1 | zero-pad]: one lane-dense input DMA.
    a = jnp.concatenate(
        [h0.reshape(B, H), x, jnp.ones((B, 1), jnp.float32)], axis=1)
    K = a.shape[1]
    if K_pad > K:
        a = jnp.pad(a, ((0, 0), (0, K_pad - K)))

    vmem = pl.BlockSpec(memory_space=pltpu.MemorySpace.VMEM)
    slab = pl.pallas_call(
        functools.partial(gru_step_kernel, I=I, H=H),
        out_shape=jax.ShapeDtypeStruct((B, O_pad), jnp.float32),
        in_specs=[vmem, vmem, vmem],
        out_specs=vmem,
    )(a, wg, whead)

    # Match PyTorch shapes: output is (seq=1, B, O), hn is (layers=1, B, H).
    return slab[:, :O].reshape(1, B, O), slab[:, O_pad - H:].reshape(1, B, H)


def gru_reference(x, h0, params):
    """Pure-JAX reference mirroring torch semantics, for validation."""
    norm = jnp.sqrt(jnp.sum(x * x, axis=1, keepdims=True))
    xn = x / jnp.maximum(norm, 1e-12)
    h = h0[0]
    gi = jnp.einsum("bi,gih->gbh", xn, params["w_ih"]) + params["b_ih"]
    gh = jnp.einsum("bh,ghk->gbk", h, params["w_hh"]) + params["b_hh"]
    r = jax.nn.sigmoid(gi[0] + gh[0])
    z = jax.nn.sigmoid(gi[1] + gh[1])
    n = jnp.tanh(gi[2] + r * gh[2])
    h_new = (1.0 - z) * n + z * h
    y = jax.nn.sigmoid(h_new @ params["w_lin"] + params["b_lin"])
    return y[None], h_new[None]


if __name__ == "__main__":
    B, I, H, O = 8, 16, 32, 8  # batch, input_size, hidden_size, output_size

    key = jax.random.PRNGKey(0)
    ks = jax.random.split(key, 8)
    scale = 1.0 / float(H) ** 0.5  # matches nn.GRU / nn.Linear uniform init range
    params = {
        "w_ih": jax.random.uniform(ks[0], (3, I, H), jnp.float32, -scale, scale),
        "w_hh": jax.random.uniform(ks[1], (3, H, H), jnp.float32, -scale, scale),
        "b_ih": jax.random.uniform(ks[2], (3, 1, H), jnp.float32, -scale, scale),
        "b_hh": jax.random.uniform(ks[3], (3, 1, H), jnp.float32, -scale, scale),
        "w_lin": jax.random.uniform(ks[4], (H, O), jnp.float32, -scale, scale),
        "b_lin": jax.random.uniform(ks[5], (1, O), jnp.float32, -scale, scale),
    }

    x = jax.random.normal(ks[6], (B, I), jnp.float32)
    h0 = jax.random.normal(ks[7], (1, B, H), jnp.float32)  # initHidden analogue

    y, hn = gru_forward(x, h0, params)
    jax.block_until_ready((y, hn))

    y_ref, hn_ref = gru_reference(x, h0, params)
    assert y.shape == (1, B, O) and hn.shape == (1, B, H)
    assert jnp.allclose(y, y_ref, atol=1e-5, rtol=1e-5)
    assert jnp.allclose(hn, hn_ref, atol=1e-5, rtol=1e-5)

    print("KERNEL_OK")
</pallas_src>

<mosaic_0001>
module attributes {stable_mosaic.version = 11 : i64} {
  func.func @gru_step_kernel(%arg0: memref<8x56xf32, #tpu.memory_space<vmem>>, %arg1: memref<56x128xf32, #tpu.memory_space<vmem>>, %arg2: memref<40x128xf32, #tpu.memory_space<vmem>>, %arg3: memref<8x128xf32, #tpu.memory_space<vmem>>) attributes {dimension_semantics = [], scalar_prefetch = 0 : i64, scratch_operands = 0 : i64, tpu.core_type = #tpu.core_type<tc>} {
    %c0 = arith.constant 0 : index
    %c0_0 = arith.constant 0 : index
    %0 = vector.load %arg0[%c0, %c0_0] : memref<8x56xf32, #tpu.memory_space<vmem>>, vector<8x56xf32>
    %1 = tpu.iota {dimensions = array<i32: 1>} : vector<8x56xi32>
    %c32_i32 = arith.constant 32 : i32
    %2 = vector.broadcast %c32_i32 : i32 to vector<8x56xi32>
    %3 = arith.cmpi sge, %1, %2 : vector<8x56xi32>
    %c48_i32 = arith.constant 48 : i32
    %4 = vector.broadcast %c48_i32 : i32 to vector<8x56xi32>
    %5 = arith.cmpi slt, %1, %4 : vector<8x56xi32>
    %6 = arith.andi %3, %5 : vector<8x56xi1>
    %7 = arith.mulf %0, %0 : vector<8x56xf32>
    %cst = arith.constant 0.000000e+00 : f32
    %8 = vector.broadcast %cst : f32 to vector<8x56xf32>
    %9 = arith.select %6, %7, %8 : vector<8x56xi1>, vector<8x56xf32>
    %cst_1 = arith.constant dense<0.000000e+00> : vector<8xf32>
    %10 = vector.multi_reduction <add>, %9, %cst_1 [1] : vector<8x56xf32> to vector<8xf32>
    %11 = vector.shape_cast %10 : vector<8xf32> to vector<8x1xf32>
    %cst_2 = arith.constant 1.000000e-24 : f32
    %12 = vector.broadcast %cst_2 : f32 to vector<8x1xf32>
    %13 = arith.maximumf %11, %12 : vector<8x1xf32>
    %14 = math.rsqrt %13 : vector<8x1xf32>
    %15 = vector.broadcast %14 : vector<8x1xf32> to vector<8x56xf32>
    %16 = arith.mulf %0, %15 : vector<8x56xf32>
    %17 = arith.select %6, %16, %0 : vector<8x56xi1>, vector<8x56xf32>
    %c0_3 = arith.constant 0 : index
    %c0_4 = arith.constant 0 : index
    %18 = vector.load %arg1[%c0_3, %c0_4] : memref<56x128xf32, #tpu.memory_space<vmem>>, vector<56x128xf32>
    %cst_5 = arith.constant dense<0.000000e+00> : vector<8x128xf32>
    %19 = tpu.matmul %17, %18, %cst_5 {dimension_numbers = #tpu.dot_dimension_numbers<[1], [0], [0], [1], [0, 0, 1, 1], [], []>} : vector<8x56xf32>, vector<56x128xf32>, vector<8x128xf32> -> vector<8x128xf32>
    %20 = vector.extract_strided_slice %17 {offsets = [0, 0], sizes = [8, 32], strides = [1, 1]} : vector<8x56xf32> to vector<8x32xf32>
    %21 = vector.extract_strided_slice %19 {offsets = [0, 0], sizes = [8, 64], strides = [1, 1]} : vector<8x128xf32> to vector<8x64xf32>
    %22 = arith.negf %21 : vector<8x64xf32>
    %23 = math.exp %22 : vector<8x64xf32>
    %cst_6 = arith.constant 1.000000e+00 : f32
    %24 = vector.broadcast %cst_6 : f32 to vector<8x64xf32>
    %25 = arith.addf %24, %23 : vector<8x64xf32>
    %26 = arith.divf %24, %25 : vector<8x64xf32>
    %27 = vector.extract_strided_slice %26 {offsets = [0, 0], sizes = [8, 32], strides = [1, 1]} : vector<8x64xf32> to vector<8x32xf32>
    %28 = vector.extract_strided_slice %26 {offsets = [0, 32], sizes = [8, 32], strides = [1, 1]} : vector<8x64xf32> to vector<8x32xf32>
    %29 = vector.extract_strided_slice %19 {offsets = [0, 64], sizes = [8, 32], strides = [1, 1]} : vector<8x128xf32> to vector<8x32xf32>
    %30 = vector.extract_strided_slice %19 {offsets = [0, 96], sizes = [8, 32], strides = [1, 1]} : vector<8x128xf32> to vector<8x32xf32>
    %31 = arith.mulf %27, %30 : vector<8x32xf32>
    %32 = arith.addf %29, %31 : vector<8x32xf32>
    %33 = math.tanh %32 : vector<8x32xf32>
    %cst_7 = arith.constant 1.000000e+00 : f32
    %34 = vector.broadcast %cst_7 : f32 to vector<8x32xf32>
    %35 = arith.subf %34, %28 : vector<8x32xf32>
    %36 = arith.mulf %35, %33 : vector<8x32xf32>
    %37 = arith.mulf %28, %20 : vector<8x32xf32>
    %38 = arith.addf %36, %37 : vector<8x32xf32>
    %c0_8 = arith.constant 0 : index
    %c0_9 = arith.constant 0 : index
    %39 = vector.load %arg2[%c0_8, %c0_9] : memref<40x128xf32, #tpu.memory_space<vmem>>, vector<32x128xf32>
    %cst_10 = arith.constant dense<0.000000e+00> : vector<8x128xf32>
    %40 = tpu.matmul %38, %39, %cst_10 {dimension_numbers = #tpu.dot_dimension_numbers<[1], [0], [0], [1], [0, 0, 1, 1], [], []>} : vector<8x32xf32>, vector<32x128xf32>, vector<8x128xf32> -> vector<8x128xf32>
    %c32 = arith.constant 32 : index
    %c0_11 = arith.constant 0 : index
    %41 = vector.load %arg2[%c32, %c0_11] : memref<40x128xf32, #tpu.memory_space<vmem>>, vector<1x128xf32>
    %42 = vector.broadcast %41 : vector<1x128xf32> to vector<8x128xf32>
    %43 = arith.addf %40, %42 : vector<8x128xf32>
    %44 = tpu.iota {dimensions = array<i32: 1>} : vector<8x128xi32>
    %c96_i32 = arith.constant 96 : i32
    %45 = vector.broadcast %c96_i32 : i32 to vector<8x128xi32>
    %46 = arith.cmpi slt, %44, %45 : vector<8x128xi32>
    %47 = arith.negf %43 : vector<8x128xf32>
    %48 = math.exp %47 : vector<8x128xf32>
    %cst_12 = arith.constant 1.000000e+00 : f32
    %49 = vector.broadcast %cst_12 : f32 to vector<8x128xf32>
    %50 = arith.addf %49, %48 : vector<8x128xf32>
    %51 = arith.divf %49, %50 : vector<8x128xf32>
    %52 = arith.select %46, %51, %43 : vector<8x128xi1>, vector<8x128xf32>
    %c0_13 = arith.constant 0 : index
    %c0_14 = arith.constant 0 : index
    %53 = vector.load %arg3[%c0_13, %c0_14] : memref<8x128xf32, #tpu.memory_space<vmem>>, vector<8x128xf32>
    tpu.vector_store %arg3[%c0_13, %c0_14], %52 {strides = array<i32>} : memref<8x128xf32, #tpu.memory_space<vmem>>, vector<8x128xf32>,
    return
  }
}

</mosaic_0001>

<bundles_post_ra>
// kernel: tpu_custom_call.1
= control target key start
LH: loop header
LB: loop body
LE: loop exit
PB: predicated region body
PF: predicated region fallthrough
CT: control target
= control target key end

     0   :  { %8 = vsyncpa [#allocation3], 0  ;;  %s568_s0 = inlined_call_operand.hbm [shape: f32[8,56], index: 0, kind: input, shape index: {}]   ;;  %s569_s1 = inlined_call_operand.hbm [shape: f32[56,128], index: 1, kind: input, shape index: {}]   ;;  %s570_s2 = inlined_call_operand.hbm [shape: f32[40,128], index: 2, kind: input, shape index: {}]   ;;  %s571_s3 = inlined_call_operand.hbm [shape: f32[8,128], index: 3, kind: output, shape index: {}]  }
   0x1   :  { %9 = vsyncpa [#allocation6], 0 }
   0x2   :  { %10 = vsyncpa [#allocation4], 0  ;;  %s467_s12 = smov [#allocation5]   ;;  %s373_s16 = scalar_lea.hbm %s569_s1, 896 }
   0x3   :  { %s26_s13 = sshll.u32 %s467_s12, 4  ;;  %p374_p0 = scmp.ne.s32.totalorder %s569_s1, %s373_s16  ;;  %s27_s13 = int_to_ptr.vmem [resolvable:$true] %s26_s13 }
   0x4   :  { %p377_p1 = scmp.lt.u32.totalorder %s373_s16, %s569_s1 }
   0x6   :  { %p379_p2 = pnand %p377_p1, %p374_p0 }
   0x8   :  { %382 = shalt.err (!%p379_p2)
}
   0x9   :  { %s383_s21 = scalar_lea.vmem %s27_s13, 896  ;;  %p388_p4 = scmp.lt.s32.totalorder %s27_s13, %s27_s13 }
   0xa   :  { %p384_p3 = scmp.ne.s32.totalorder %s27_s13, %s383_s21  ;;  %p389_p5 = scmp.lt.s32.totalorder %s383_s21, %s383_s21 }
   0xc   :  { %p390_p6 = por %p389_p5, %p388_p4 }
   0xe   :  { %p391_p7 = pnand %p390_p6, %p384_p3 }
  0x10   :  { %394 = shalt.err (!%p391_p7)
}
  0x11   :  { %s468_s22 = smov 128   ;;  %s469_s23 = smov 8  }
  0x12   :  { %32 = dma.hbm_to_vmem [thread:$0]  %s569_s1, 896, %s27_s13, [#allocation6], %s468_s22, %s468_s22, %s469_s23  }
  0x13   :  { %s470_s26 = smov [#allocation2]   ;;  %s471_s28 = smov [#allocation7]  }
  0x14   :  { %s17_s27 = sshll.u32 %s470_s26, 4  ;;  %s38_s29 = sshll.u32 %s471_s28, 4  ;;  %s18_s27 = int_to_ptr.vmem [resolvable:$true] %s17_s27  ;;  %s39_s29 = int_to_ptr.vmem [resolvable:$true] %s38_s29 }
  0x15   :  { %s395_s5 = scalar_lea.hbm %s568_s0, 128 }
  0x16   :  { %p396_p8 = scmp.ne.s32.totalorder %s568_s0, %s395_s5  ;;  %p399_p9 = scmp.lt.u32.totalorder %s395_s5, %s568_s0 }
  0x18   :  { %p401_p10 = pnand %p399_p9, %p396_p8 }
  0x1a   :  { %404 = shalt.err (!%p401_p10)
}
  0x1b   :  { %s405_s1 = scalar_lea.vmem %s18_s27, 128  ;;  %p410_p12 = scmp.lt.s32.totalorder %s18_s27, %s18_s27 }
  0x1c   :  { %p406_p11 = scmp.ne.s32.totalorder %s18_s27, %s405_s1  ;;  %p411_p13 = scmp.lt.s32.totalorder %s405_s1, %s405_s1 }
  0x1e   :  { %p412_p0 = por %p411_p13, %p410_p12 }
  0x20   :  { %p413_p1 = pnand %p412_p0, %p406_p11 }
  0x22   :  { %416 = shalt.err (!%p413_p1)
}
  0x23   :  { %20 = dma.hbm_to_vmem [thread:$0]  %s568_s0, 128, %s18_s27, [#allocation3]  }
  0x24   :  { %s417_s14 = scalar_lea.hbm %s570_s2, 640 }
  0x25   :  { %p418_p2 = scmp.ne.s32.totalorder %s570_s2, %s417_s14  ;;  %p421_p3 = scmp.lt.u32.totalorder %s417_s14, %s570_s2 }
  0x27   :  { %p423_p4 = pnand %p421_p3, %p418_p2 }
  0x29   :  { %426 = shalt.err (!%p423_p4)
}
  0x2a   :  { %s427_s19 = scalar_lea.vmem %s39_s29, 640  ;;  %p432_p6 = scmp.lt.s32.totalorder %s39_s29, %s39_s29 }
  0x2b   :  { %p428_p5 = scmp.ne.s32.totalorder %s39_s29, %s427_s19  ;;  %p433_p7 = scmp.lt.s32.totalorder %s427_s19, %s427_s19 }
  0x2d   :  { %p434_p8 = por %p433_p7, %p432_p6 }
  0x2f   :  { %p435_p9 = pnand %p434_p8, %p428_p5 }
  0x31   :  { %438 = shalt.err (!%p435_p9)
}
  0x32   :  { %44 = dma.hbm_to_vmem [thread:$0]  %s570_s2, 640, %s39_s29, [#allocation6], %s468_s22, %s468_s22, %s469_s23  }
  0x33   :  { %461 = dma.done.wait [#allocation3], 128  }
  0x34   :  { %462 = vsyncadd [#allocation3], 4294967168 }
  0x35   :  { %463 = dma.done.wait [#allocation6], 1536  }
  0x36   :  { %464 = vsyncadd [#allocation6], 4294965760  ;;  %v55_v0 = vlaneseq  ;;  %v54_v2 = vld [vmem:[#allocation2] sm:$0xff]  ;;  %vm62_vm3 = vcmask 457728   ;;  %v70_v7 = vld [vmem:[#allocation5] sm:$0xff]  ;;  %v472_v10 = vmov 0.0|0.0  }
  0x37   :  { %v60_v4 = vmul.f32 %v54_v2, %v54_v2  ;;  %v71_v8 = vld [vmem:[#allocation5 + $0x8] sm:$0xff]  ;;  %334 = vmatprep.subr.bf16.mxu0 %v472_v10  ;;  %v72_v11 = vld [vmem:[#allocation5 + $0x10] sm:$0xff]  ;;  %v73_v12 = vld [vmem:[#allocation5 + $0x18] sm:$0xff]  ;;  %343 = vmatprep.subr.bf16.mxu1 %v472_v10  ;;  %vm473_vm4 = vmmov 0   ;;  %v474_v14 = vmov 0.0   ;;  %s475_s2 = smov 32  }
  0x38   :  { %v541_v1 = vand.u32 127, %v55_v0  ;;  %v335_v9 = vpack.c.bf16 %v71_v8, %v70_v7  ;;  %v338_v13 = vpack.c.bf16 %v73_v12, %v72_v11  ;;  %320 = vmatprep.mubr.msk.f32.mxu0 %vm473_vm4, %v474_v14  ;;  %v74_v15 = vld [vmem:[#allocation5 + $0x20] sm:$0xff]  ;;  %v75_v16 = vld [vmem:[#allocation5 + $0x28] sm:$0xff]  ;;  %331 = vmatprep.mubr.msk.f32.mxu1 %vm473_vm4, %v474_v14  ;;  %v76_v18 = vld [vmem:[#allocation5 + $0x30] sm:$0xff]  ;;  %s476_s21 = smov 64   ;;  %s477_s22 = smov 96  }
  0x39   :  { %v341_v17 = vpack.c.bf16 %v75_v16, %v74_v15  ;;  %v178_v34 = vld [vmem:[#allocation7] sm:$0xff]  ;;  %v179_v35 = vld [vmem:[#allocation7 + $0x8] sm:$0xff]  ;;  %v180_v36 = vld [vmem:[#allocation7 + $0x10] sm:$0xff]  ;;  %vm190_vm5 = vcmask 261120   ;;  %s478_s23 = smov [#allocation8]  }
  0x3a   :  { %vm57_vm0 = vcmp.ge.s32.totalorder %v541_v1, 32  ;;  %vm58_vm1 = vcmp.lt.s32.totalorder %v541_v1, 48  ;;  %336 = vmatpush3.bf16.msra.mxu0 %v335_v9  ;;  %v344_v37 = vpack.c.bf16 %v179_v35, %v178_v34  ;;  %v181_v38 = vld [vmem:[#allocation7 + $0x18] sm:$0xff]  ;;  %v290_v48 = vld [vmem:[#allocation7 + $0x20] ss:$0 sm:$0xff]  ;;  %s278_s24 = sshll.u32 %s478_s23, 4  ;;  %s279_s24 = int_to_ptr.vmem [resolvable:$true] %s278_s24 }
  0x3b   :  { %vm545_vm2 = vmand %vm57_vm0, %vm58_vm1  ;;  %337 = vmatprep.subr.bf16.mxu0 %v472_v10  ;;  %v347_v39 = vpack.c.bf16 %v181_v38, %v180_v36  ;;  %vm263_vm6 = vcmp.lt.s32.totalorder %v541_v1, 96  ;;  %s439_s25 = scalar_lea.vmem %s279_s24, 128  ;;  %p444_p11 = scmp.lt.s32.totalorder %s279_s24, %s279_s24 }
  0x3c   :  { %v61_v5 = vsel %vm545_vm2, %v60_v4, 0.0  ;;  %345 = vmatpush3.bf16.msra.mxu1 %v344_v37  ;;  %p440_p10 = scmp.ne.s32.totalorder %s279_s24, %s439_s25  ;;  %p445_p12 = scmp.lt.s32.totalorder %s439_s25, %s439_s25 }
  0x3d   :  { %v63_v6 = vsel %vm62_vm3, %v61_v5, 0.0  ;;  %346 = vmatprep.subr.bf16.mxu1 %v472_v10 }
  0x3e   :  { %64 = vadd.xlane.f32.xlu0 %v63_v6  ;;  %339 = vmatpush3.bf16.msra.mxu0 %v338_v13  ;;  %p446_p13 = por %p445_p12, %p444_p11 }
  0x3f   :  { %340 = vmatprep.subr.bf16.mxu0 %v472_v10 }
  0x40   :  { %348 = vmatpush3.bf16.msra.mxu1 %v347_v39  ;;  %p447_p0 = pnand %p446_p13, %p440_p10 }
  0x42   :  { %342 = vmatpush3.bf16.msra.mxu0 %v341_v17 }
  0x43   :  { %318 = vmatprep.subr.mxu0 %v474_v14 }
  0x46   :  { %319 = vmatpush3.msra.mxu0 %v76_v18 }
  0xcb   :  { %v65_v19 = vpop.xlane.xlu0 %64 }
  0xcc   :  { %v66_v20 = vmax.f32 %v65_v19, 1e-24 }
  0xce   :  { %361 = vrsqrt.f32 %v66_v20 }
  0xd8   :  { %v362_v21 = vpop.eup %361 }
  0xd9   :  { %v68_v22 = vmul.f32 %v362_v21, %v54_v2 }
  0xdb   :  { %v69_v23 = vsel %vm545_vm2, %v68_v22, %v54_v2 }
  0xdc   :  { %321 = vmatmul.mubr.msk.f32.vlgmr.msra.gmra.mrb[0].mxu0 %vm62_vm3, %v69_v23 }
 0x1af   :  { %v146_v24 = vpop.f32.mrb[0].mxu0 }
 0x1b0   :  { %157 = vrot.lane.b32.xlu0 %v146_v24, %s475_s2  ;;  %v322_v25 = vpop.f32.mrb[1].mxu0  ;;  %v289_v26 = vmul.f32 -1.442695, %v146_v24 }
 0x1b2   :  { %363 = vpow2.f32 %v289_v26 }
 0x1bc   :  { %v364_v27 = vpop.eup %363 }
 0x1bd   :  { %v153_v28 = vadd.f32 1.0, %v364_v27 }
 0x1bf   :  { %365 = vrcp.f32 %v153_v28 }
 0x1c9   :  { %v366_v29 = vpop.eup %365 }
 0x1ca   :  { %v167_v42 = vsub.f32 1.0, %v366_v29 }
 0x222   :  { %v158_v30 = vpop.permute.xlu0 %157 }
 0x223   :  { %v160_v31 = vmul.f32 %v366_v29, %v158_v30 }
 0x225   :  { %162 = vrot.lane.b32.xlu1 %v160_v31, %s476_s21 }
 0x297   :  { %v163_v32 = vpop.permute.xlu1 %162 }
 0x298   :  { %v165_v33 = vadd.f32 %v163_v32, %v146_v24 }
 0x29a   :  { %367 = vtanh.f32 %v165_v33 }
 0x2a4   :  { %v368_v40 = vpop.eup %367 }
 0x2a5   :  { %169 = vrot.lane.b32.xlu1 %v368_v40, %s477_s22 }
 0x2a9   :  { %173 = vrot.lane.b32.xlu1 %v69_v23, %s475_s2 }
 0x317   :  { %v170_v41 = vpop.permute.xlu1 %169 }
 0x318   :  { %v172_v44 = vmul.f32 %v170_v41, %v167_v42 }
 0x31b   :  { %v174_v43 = vpop.permute.xlu1 %173 }
 0x31c   :  { %v176_v45 = vmul.f32 %v366_v29, %v174_v43 }
 0x31e   :  { %v177_v46 = vadd.f32 %v176_v45, %v172_v44 }
 0x320   :  { %188 = vrot.lane.b32.xlu1 %v177_v46, %s477_s22 }
 0x392   :  { %v189_v47 = vpop.permute.xlu1 %188 }
 0x393   :  { %332 = vmatmul.mubr.msk.f32.vlgmr.msra.gmra.mrb[0].mxu1 %vm190_vm5, %v189_v47 }
 0x466   :  { %v259_v49 = vpop.f32.mrb[0].mxu1 }
 0x467   :  { %v260_v50 = vadd.f32 %v290_v48, %v259_v49  ;;  %v333_v51 = vpop.f32.mrb[1].mxu1 }
 0x469   :  { %v292_v52 = vmul.f32 -1.442695, %v260_v50 }
 0x46b   :  { %369 = vpow2.f32 %v292_v52 }
 0x475   :  { %v370_v53 = vpop.eup %369 }
 0x476   :  { %v267_v54 = vadd.f32 1.0, %v370_v53 }
 0x478   :  { %371 = vrcp.f32 %v267_v54 }
 0x482   :  { %v372_v55 = vpop.eup %371 }
 0x483   :  { %v270_v56 = vsel %vm263_vm6, %v372_v55, %v260_v50 }
 0x484   :  { %271 = vst [vmem:[#allocation8] sm:$0xff] %v270_v56 }
 0x485   :  { %450 = shalt.err (!%p447_p0)
}
 0x486   :  { %s451_s28 = scalar_lea.hbm %s571_s3, 128 }
 0x487   :  { %p452_p1 = scmp.ne.s32.totalorder %s571_s3, %s451_s28  ;;  %p455_p2 = scmp.lt.u32.totalorder %s451_s28, %s571_s3 }
 0x489   :  { %p457_p3 = pnand %p455_p2, %p452_p1 }
 0x48b   :  { %460 = shalt.err (!%p457_p3)
}
 0x48c   :  { %281 = dma.vmem_to_hbm [thread:$0]  %s279_s24, 128, %s571_s3, [#allocation4]  }
 0x48d   :  { %465 = dma.done.wait [#allocation4], 128  }
 0x48e   :  { %466 = vsyncadd [#allocation4], 4294967168 }
 0x48f   :  { %285 = vsyncpa [#allocation3], 1 }
 0x490   :  { %286 = vsyncpa [#allocation6], 1 }
 0x491   :  { %287 = vsyncpa [#allocation4], 1 }

</bundles_post_ra>
